<compile_context>
chip_gen: v6e
topology: v6e:2x2x1
jax: 0.10.0
libtpu: 0.0.40
codegen_flags: <defaults>
</compile_context>

<pallas_src>
import jax
import jax.numpy as jnp
from jax.experimental import pallas as pl
from jax.experimental.pallas import tpu as pltpu

HIDDEN = 2048          # fixed by nn.Parameter(torch.ones(2048))
ALPHA = 0.0            # module attribute (not learned)
BETA = 1.0 - ALPHA


def _annealer_kernel(x_ref, c_ref, o_ref):
    # x_ref: (tb, H) tile of the input
    # c_ref: (1, H) parameter block (resident across grid steps, broadcast over rows)
    x = x_ref[...].astype(jnp.float32)
    c = c_ref[...].astype(jnp.float32)
    # BETA == 1.0 here, so the multiply folds away at trace time.
    z = x if BETA == 1.0 else BETA * x
    o_ref[...] = (c * x * jax.nn.sigmoid(z)).astype(o_ref.dtype)


def _round_up(n, m):
    return ((n + m - 1) // m) * m


def _pick_batch_tile(B, tb_max, sublane):
    """Fixed large tile; independent of B's divisors (ragged tail is masked)."""
    # Never make the tile (much) bigger than the batch itself.
    tb = min(tb_max, _round_up(B, sublane))
    # Guarantee >= 2 grid steps when there is enough work, so both v7x
    # TensorCores can share the stream under dimension_semantics=("parallel",).
    if B >= 2 * sublane and pl.cdiv(B, tb) < 2:
        tb = _round_up(pl.cdiv(B, 2), sublane)
    return max(tb, sublane)


def annealer_forward(x, c, *, tb=512):
    """x: [B, H], c: [H] -> [B, H]  (computes c * x * sigmoid(beta * x))."""
    B, H = x.shape
    assert c.shape == (H,)

    itemsize = jnp.dtype(x.dtype).itemsize
    sublane = 8 if itemsize >= 4 else 16        # bf16 packs two rows per sublane
    tb = _pick_batch_tile(B, tb, sublane)
    grid = (pl.cdiv(B, tb),)                    # ragged last block is fine (elementwise)

    c2d = c.reshape(1, H)                       # present c lane-dense as (1, H)

    cost = pl.CostEstimate(
        flops=3 * B * H,                        # two muls + sigmoid arithmetic
        transcendentals=B * H,                  # one exp per element
        bytes_accessed=2 * B * H * itemsize + H * jnp.dtype(c.dtype).itemsize,
    )

    # NOTE: if the caller can donate x, input_output_aliases={0: 0} removes the
    # separate output allocation; omitted here so the demo can reuse x.
    return pl.pallas_call(
        _annealer_kernel,
        out_shape=jax.ShapeDtypeStruct((B, H), x.dtype),
        grid_spec=pltpu.PrefetchScalarGridSpec(
            num_scalar_prefetch=0,
            grid=grid,
            in_specs=[
                pl.BlockSpec((tb, H), lambda i: (i, 0)),   # x: one row-tile per step
                pl.BlockSpec((1, H), lambda i: (0, 0)),    # c: same block every step (resident)
            ],
            out_specs=pl.BlockSpec((tb, H), lambda i: (i, 0)),
        ),
        compiler_params=pltpu.CompilerParams(
            dimension_semantics=("parallel",),             # shard batch across TCs on v7x
            vmem_limit_bytes=32 * 1024 * 1024,             # 512-row f32 tiles fit on v5e/v6e/v7x
        ),
        cost_estimate=cost,
    )(x, c2d)


if __name__ == "__main__":
    key = jax.random.PRNGKey(0)
    B = 8
    x = jax.random.normal(key, (B, HIDDEN), dtype=jnp.float32)

    # Deterministic parameter init, matching torch.ones(2048).
    c = jnp.ones((HIDDEN,), dtype=jnp.float32)

    out = annealer_forward(x, c)
    out = jax.block_until_ready(out)

    # Sanity check against the pure-JAX reference of the PyTorch forward.
    ref = c * x * jax.nn.sigmoid(BETA * x)
    assert out.shape == (B, HIDDEN)
    assert jnp.allclose(out, ref, atol=1e-5, rtol=1e-5)

    # Also exercise a batch size that does NOT divide the tile (ragged tail).
    B2 = 25
    x2 = jax.random.normal(jax.random.PRNGKey(1), (B2, HIDDEN), dtype=jnp.float32)
    out2 = jax.block_until_ready(annealer_forward(x2, c))
    ref2 = c * x2 * jax.nn.sigmoid(BETA * x2)
    assert jnp.allclose(out2, ref2, atol=1e-5, rtol=1e-5)

    print("KERNEL_OK")
</pallas_src>

<mosaic_0001>
module attributes {stable_mosaic.version = 11 : i64} {
  func.func @_annealer_kernel(%arg0: i32, %arg1: memref<8x2048xf32, #tpu.memory_space<vmem>>, %arg2: memref<1x2048xf32, #tpu.memory_space<vmem>>, %arg3: memref<8x2048xf32, #tpu.memory_space<vmem>>) attributes {dimension_semantics = [#tpu.dimension_semantics<parallel>], iteration_bounds = array<i64: 1>, scalar_prefetch = 0 : i64, scratch_operands = 0 : i64, tpu.core_type = #tpu.core_type<tc>, window_params = [{transform_indices = @transform_0, window_bounds = array<i64: 8, 2048>}, {pipeline_mode = #tpu.pipeline_mode<synchronous>, transform_indices = @transform_1, window_bounds = array<i64: 1, 2048>}, {transform_indices = @transform_2, window_bounds = array<i64: 8, 2048>}]} {
    %c0 = arith.constant 0 : index
    %c0_0 = arith.constant 0 : index
    %0 = vector.load %arg1[%c0, %c0_0] : memref<8x2048xf32, #tpu.memory_space<vmem>>, vector<8x2048xf32>
    %c0_1 = arith.constant 0 : index
    %c0_2 = arith.constant 0 : index
    %1 = vector.load %arg2[%c0_1, %c0_2] : memref<1x2048xf32, #tpu.memory_space<vmem>>, vector<1x2048xf32>
    %2 = vector.broadcast %1 : vector<1x2048xf32> to vector<8x2048xf32>
    %3 = arith.mulf %2, %0 : vector<8x2048xf32>
    %4 = arith.negf %0 : vector<8x2048xf32>
    %5 = math.exp %4 : vector<8x2048xf32>
    %cst = arith.constant 1.000000e+00 : f32
    %6 = vector.broadcast %cst : f32 to vector<8x2048xf32>
    %7 = arith.addf %6, %5 : vector<8x2048xf32>
    %8 = arith.divf %6, %7 : vector<8x2048xf32>
    %9 = arith.mulf %3, %8 : vector<8x2048xf32>
    %c0_3 = arith.constant 0 : index
    %c0_4 = arith.constant 0 : index
    %10 = vector.load %arg3[%c0_3, %c0_4] : memref<8x2048xf32, #tpu.memory_space<vmem>>, vector<8x2048xf32>
    tpu.vector_store %arg3[%c0_3, %c0_4], %9 {strides = array<i32>} : memref<8x2048xf32, #tpu.memory_space<vmem>>, vector<8x2048xf32>,
    return
  }
  func.func @transform_0(%arg0: i32) -> (i32, i32) {
    %c0_i32 = arith.constant 0 : i32
    %c0_i32_0 = arith.constant 0 : i32
    return %arg0, %c0_i32 : i32, i32
  }
  func.func @transform_1(%arg0: i32) -> (i32, i32) {
    %c0_i32 = arith.constant 0 : i32
    %c0_i32_0 = arith.constant 0 : i32
    %c0_i32_1 = arith.constant 0 : i32
    return %c0_i32, %c0_i32_0 : i32, i32
  }
  func.func @transform_2(%arg0: i32) -> (i32, i32) {
    %c0_i32 = arith.constant 0 : i32
    %c0_i32_0 = arith.constant 0 : i32
    return %arg0, %c0_i32 : i32, i32
  }
}

</mosaic_0001>

<bundles_post_ra>
// kernel: tpu_custom_call.1
= control target key start
LH: loop header
LB: loop body
LE: loop exit
PB: predicated region body
PF: predicated region fallthrough
CT: control target
= control target key end

     0   :  { %7 = vsyncpa [#allocation3], 0  ;;  %s566_s0 = inlined_call_operand.hbm [shape: f32[8,2048], index: 0, kind: input, shape index: {}]   ;;  %s567_s1 = inlined_call_operand.hbm [shape: f32[1,2048], index: 1, kind: input, shape index: {}]   ;;  %s568_s2 = inlined_call_operand.hbm [shape: f32[8,2048], index: 2, kind: output, shape index: {}]  }
   0x1   :  { %8 = vsyncpa [#allocation6], 0 }
   0x2   :  { %9 = vsyncpa [#allocation4], 0  ;;  %s445_s9 = smov [#allocation2]   ;;  %s446_s11 = smov [#allocation5]  }
   0x3   :  { %s16_s10 = sshll.u32 %s445_s9, 4  ;;  %s26_s12 = sshll.u32 %s446_s11, 4  ;;  %s17_s10 = int_to_ptr.vmem [resolvable:$true] %s16_s10  ;;  %s27_s12 = int_to_ptr.vmem [resolvable:$true] %s26_s12 }
   0x4   :  { %s387_s13 = scalar_lea.vmem %s17_s10, 2048  ;;  %p392_p1 = scmp.lt.s32.totalorder %s17_s10, %s17_s10 }
   0x5   :  { %p388_p0 = scmp.ne.s32.totalorder %s17_s10, %s387_s13  ;;  %p393_p2 = scmp.lt.s32.totalorder %s387_s13, %s387_s13 }
   0x7   :  { %p394_p3 = por %p393_p2, %p392_p1 }
   0x9   :  { %p395_p4 = pnand %p394_p3, %p388_p0 }
   0xb   :  { %398 = shalt.err (!%p395_p4)
}
   0xc   :  { %19 = dma.hbm_to_vmem [thread:$0]  %s566_s0, 2048, %s17_s10, [#allocation3]  }
   0xd   :  { %s407_s16 = scalar_lea.vmem %s27_s12, 256  ;;  %p412_p6 = scmp.lt.s32.totalorder %s27_s12, %s27_s12 }
   0xe   :  { %p408_p5 = scmp.ne.s32.totalorder %s27_s12, %s407_s16  ;;  %p413_p7 = scmp.lt.s32.totalorder %s407_s16, %s407_s16 }
  0x10   :  { %p414_p8 = por %p413_p7, %p412_p6 }
  0x12   :  { %p415_p9 = pnand %p414_p8, %p408_p5 }
  0x14   :  { %418 = shalt.err (!%p415_p9)
}
  0x15   :  { %29 = dma.hbm_to_vmem [thread:$0]  %s567_s1, 256, %s27_s12, [#allocation6]  }
  0x16   :  { %439 = dma.done.wait [#allocation3], 2048  }
  0x17   :  { %440 = vsyncadd [#allocation3], 4294965248 }
  0x18   :  { %441 = dma.done.wait [#allocation6], 256  }
  0x19   :  { %442 = vsyncadd [#allocation6], 4294967040  ;;  %v469_v0 = vld [vmem:[#allocation2] sm:$0xff]  ;;  %v471_v1 = vld [vmem:[#allocation2 + $0x8] sm:$0xff]  ;;  %v56_v29 = vlaneseq  ;;  %s447_s0 = smov [#allocation7]  }
  0x1a   :  { %v296_v2 = vmul.f32 -1.442695, %v469_v0  ;;  %v297_v3 = vmul.f32 -1.442695, %v471_v1  ;;  %v475_v4 = vld [vmem:[#allocation2 + $0x10] sm:$0xff]  ;;  %v477_v5 = vld [vmem:[#allocation2 + $0x18] sm:$0xff] }
  0x1b   :  { %v298_v6 = vmul.f32 -1.442695, %v475_v4  ;;  %v299_v7 = vmul.f32 -1.442695, %v477_v5  ;;  %v481_v8 = vld [vmem:[#allocation2 + $0x20] sm:$0xff]  ;;  %v483_v9 = vld [vmem:[#allocation2 + $0x28] sm:$0xff] }
  0x1c   :  { %315 = vpow2.f32 %v296_v2  ;;  %v485_v10 = vld [vmem:[#allocation2 + $0x30] sm:$0xff]  ;;  %v300_v11 = vmul.f32 -1.442695, %v481_v8  ;;  %v488_v12 = vld [vmem:[#allocation2 + $0x38] sm:$0xff]  ;;  %v301_v13 = vmul.f32 -1.442695, %v483_v9 }
  0x1d   :  { %317 = vpow2.f32 %v297_v3  ;;  %v491_v14 = vld [vmem:[#allocation2 + $0x40] sm:$0xff]  ;;  %v302_v15 = vmul.f32 -1.442695, %v485_v10  ;;  %v494_v16 = vld [vmem:[#allocation2 + $0x48] sm:$0xff]  ;;  %v303_v17 = vmul.f32 -1.442695, %v488_v12 }
  0x1e   :  { %319 = vpow2.f32 %v298_v6  ;;  %v497_v18 = vld [vmem:[#allocation2 + $0x50] sm:$0xff]  ;;  %v304_v19 = vmul.f32 -1.442695, %v491_v14  ;;  %v500_v20 = vld [vmem:[#allocation2 + $0x58] sm:$0xff]  ;;  %v305_v21 = vmul.f32 -1.442695, %v494_v16 }
  0x1f   :  { %321 = vpow2.f32 %v299_v7  ;;  %v503_v22 = vld [vmem:[#allocation2 + $0x60] sm:$0xff]  ;;  %v306_v23 = vmul.f32 -1.442695, %v497_v18  ;;  %v506_v24 = vld [vmem:[#allocation2 + $0x68] sm:$0xff]  ;;  %v307_v25 = vmul.f32 -1.442695, %v500_v20 }
  0x20   :  { %323 = vpow2.f32 %v300_v11  ;;  %v509_v26 = vld [vmem:[#allocation2 + $0x70] sm:$0xff]  ;;  %v308_v27 = vmul.f32 -1.442695, %v503_v22  ;;  %v512_v28 = vld [vmem:[#allocation2 + $0x78] sm:$0xff]  ;;  %v309_v30 = vmul.f32 -1.442695, %v506_v24 }
  0x21   :  { %325 = vpow2.f32 %v301_v13  ;;  %v310_v31 = vmul.f32 -1.442695, %v509_v26  ;;  %v311_v32 = vmul.f32 -1.442695, %v512_v28  ;;  %v517_v35 = vshrl.u32 %v56_v29, 7  ;;  %v52_v47 = vld [vmem:[#allocation5] sm:$0xff] }
  0x22   :  { %327 = vpow2.f32 %v302_v15  ;;  %s286_s1 = sshll.u32 %s447_s0, 4  ;;  %s287_s1 = int_to_ptr.vmem [resolvable:$true] %s286_s1 }
  0x23   :  { %329 = vpow2.f32 %v303_v17  ;;  %v58_v44 = vsub.s32 0, %v517_v35  ;;  %v62_v48 = vsub.s32 1, %v517_v35  ;;  %v66_v51 = vsub.s32 2, %v517_v35  ;;  %s419_s19 = scalar_lea.vmem %s287_s1, 2048  ;;  %p424_p11 = scmp.lt.s32.totalorder %s287_s1, %s287_s1 }
  0x24   :  { %331 = vpow2.f32 %v304_v19  ;;  %v70_v54 = vsub.s32 3, %v517_v35  ;;  %v74_v58 = vsub.s32 4, %v517_v35  ;;  %v78_v62 = vsub.s32 5, %v517_v35  ;;  %p420_p10 = scmp.ne.s32.totalorder %s287_s1, %s419_s19  ;;  %p425_p12 = scmp.lt.s32.totalorder %s419_s19, %s419_s19 }
  0x25   :  { %333 = vpow2.f32 %v305_v21  ;;  %v59_v57 = vrot.slane %v52_v47, %v58_v44  ;;  %v63_v61 = vrot.slane %v52_v47, %v62_v48  ;;  %v67_v3 = vrot.slane %v52_v47, %v66_v51 }
  0x26   :  { %335 = vpow2.f32 %v306_v23  ;;  %v82_v6 = vsub.s32 6, %v517_v35  ;;  %v71_v13 = vrot.slane %v52_v47, %v70_v54  ;;  %v86_v15 = vsub.s32 7, %v517_v35  ;;  %p426_p13 = por %p425_p12, %p424_p11 }
  0x27   :  { %337 = vpow2.f32 %v307_v25  ;;  %v136_v21 = vmul.f32 %v59_v57, %v469_v0  ;;  %v75_v23 = vrot.slane %v52_v47, %v74_v58  ;;  %v137_v29 = vmul.f32 %v63_v61, %v471_v1 }
  0x28   :  { %339 = vpow2.f32 %v308_v27  ;;  %v83_v0 = vrot.slane %v52_v47, %v82_v6  ;;  %v87_v1 = vrot.slane %v52_v47, %v86_v15  ;;  %p427_p0 = pnand %p426_p13, %p420_p10 }
  0x29   :  { %v316_v33 = vpop.eup %315  ;;  %341 = vpow2.f32 %v309_v30  ;;  %v79_v30 = vrot.slane %v52_v47, %v78_v62 }
  0x2a   :  { %v318_v34 = vpop.eup %317  ;;  %v200_v36 = vadd.f32 1.0, %v316_v33  ;;  %343 = vpow2.f32 %v310_v31  ;;  %v53_v31 = vld [vmem:[#allocation5 + $0x8] sm:$0xff] }
  0x2b   :  { %v320_v37 = vpop.eup %319  ;;  %v201_v38 = vadd.f32 1.0, %v318_v34  ;;  %345 = vpow2.f32 %v311_v32  ;;  %v138_v34 = vmul.f32 %v67_v3, %v475_v4  ;;  %v99_v47 = vrot.slane %v53_v31, %v66_v51 }
  0x2c   :  { %v322_v39 = vpop.eup %321  ;;  %347 = vrcp.f32 %v200_v36  ;;  %v202_v40 = vadd.f32 1.0, %v320_v37  ;;  %v119_v3 = vrot.slane %v53_v31, %v86_v15 }
  0x2d   :  { %v324_v41 = vpop.eup %323  ;;  %349 = vrcp.f32 %v201_v38  ;;  %v203_v42 = vadd.f32 1.0, %v322_v39  ;;  %v139_v38 = vmul.f32 %v71_v13, %v477_v5 }
  0x2e   :  { %v326_v43 = vpop.eup %325  ;;  %351 = vrcp.f32 %v202_v40  ;;  %v204_v45 = vadd.f32 1.0, %v324_v41  ;;  %v151_v35 = vmul.f32 %v119_v3, %v512_v28 }
  0x2f   :  { %v328_v46 = vpop.eup %327  ;;  %353 = vrcp.f32 %v203_v42  ;;  %v205_v49 = vadd.f32 1.0, %v326_v43  ;;  %v140_v42 = vmul.f32 %v75_v23, %v481_v8  ;;  %v91_v43 = vrot.slane %v53_v31, %v58_v44 }
  0x30   :  { %v330_v50 = vpop.eup %329  ;;  %355 = vrcp.f32 %v204_v45  ;;  %v206_v52 = vadd.f32 1.0, %v328_v46  ;;  %v141_v46 = vmul.f32 %v79_v30, %v483_v9  ;;  %v103_v8 = vrot.slane %v53_v31, %v70_v54 }
  0x31   :  { %v332_v53 = vpop.eup %331  ;;  %357 = vrcp.f32 %v205_v49  ;;  %v207_v55 = vadd.f32 1.0, %v330_v50  ;;  %v95_v49 = vrot.slane %v53_v31, %v62_v48  ;;  %v144_v9 = vmul.f32 %v91_v43, %v491_v14 }
  0x32   :  { %v334_v56 = vpop.eup %333  ;;  %359 = vrcp.f32 %v206_v52  ;;  %v208_v59 = vadd.f32 1.0, %v332_v53  ;;  %v142_v52 = vmul.f32 %v83_v0, %v485_v10  ;;  %v107_v48 = vrot.slane %v53_v31, %v74_v58 }
  0x33   :  { %v336_v60 = vpop.eup %335  ;;  %361 = vrcp.f32 %v207_v55  ;;  %v209_v63 = vadd.f32 1.0, %v334_v56  ;;  %v143_v56 = vmul.f32 %v87_v1, %v488_v12  ;;  %v145_v51 = vmul.f32 %v95_v49, %v494_v16 }
  0x34   :  { %v338_v2 = vpop.eup %337  ;;  %363 = vrcp.f32 %v208_v59  ;;  %v210_v7 = vadd.f32 1.0, %v336_v60  ;;  %v111_v60 = vrot.slane %v53_v31, %v78_v62  ;;  %v146_v54 = vmul.f32 %v99_v47, %v497_v18 }
  0x35   :  { %v340_v11 = vpop.eup %339  ;;  %365 = vrcp.f32 %v209_v63  ;;  %v211_v17 = vadd.f32 1.0, %v338_v2  ;;  %v115_v63 = vrot.slane %v53_v31, %v82_v6  ;;  %v147_v58 = vmul.f32 %v103_v8, %v500_v20 }
  0x36   :  { %v342_v19 = vpop.eup %341  ;;  %367 = vrcp.f32 %v210_v7  ;;  %v212_v25 = vadd.f32 1.0, %v340_v11  ;;  %v148_v62 = vmul.f32 %v107_v48, %v503_v22  ;;  %v149_v18 = vmul.f32 %v111_v60, %v506_v24 }
  0x37   :  { %v344_v27 = vpop.eup %343  ;;  %369 = vrcp.f32 %v211_v17  ;;  %v213_v32 = vadd.f32 1.0, %v342_v19  ;;  %v150_v19 = vmul.f32 %v115_v63, %v509_v26 }
  0x38   :  { %v346_v33 = vpop.eup %345  ;;  %371 = vrcp.f32 %v212_v25  ;;  %v214_v36 = vadd.f32 1.0, %v344_v27 }
  0x39   :  { %v348_v37 = vpop.eup %347  ;;  %373 = vrcp.f32 %v213_v32  ;;  %v215_v39 = vadd.f32 1.0, %v346_v33 }
  0x3a   :  { %v350_v40 = vpop.eup %349  ;;  %v248_v41 = vmul.f32 %v348_v37, %v136_v21  ;;  %375 = vrcp.f32 %v214_v36 }
  0x3b   :  { %v352_v4 = vpop.eup %351  ;;  %v249_v45 = vmul.f32 %v350_v40, %v137_v29  ;;  %377 = vrcp.f32 %v215_v39 }
  0x3c   :  { %v354_v50 = vpop.eup %353  ;;  %264 = vst [vmem:[#allocation7] sm:$0xff] %v248_v41  ;;  %v250_v5 = vmul.f32 %v352_v4, %v138_v34 }
  0x3d   :  { %v356_v53 = vpop.eup %355  ;;  %265 = vst [vmem:[#allocation7 + $0x8] sm:$0xff] %v249_v45  ;;  %v251_v55 = vmul.f32 %v354_v50, %v139_v38 }
  0x3e   :  { %v358_v44 = vpop.eup %357  ;;  %266 = vst [vmem:[#allocation7 + $0x10] sm:$0xff] %v250_v5  ;;  %v252_v57 = vmul.f32 %v356_v53, %v140_v42 }
  0x3f   :  { %v360_v59 = vpop.eup %359  ;;  %267 = vst [vmem:[#allocation7 + $0x18] sm:$0xff] %v251_v55  ;;  %v253_v10 = vmul.f32 %v358_v44, %v141_v46 }
  0x40   :  { %v362_v12 = vpop.eup %361  ;;  %268 = vst [vmem:[#allocation7 + $0x20] sm:$0xff] %v252_v57  ;;  %v254_v61 = vmul.f32 %v360_v59, %v142_v52 }
  0x41   :  { %v364_v14 = vpop.eup %363  ;;  %269 = vst [vmem:[#allocation7 + $0x28] sm:$0xff] %v253_v10  ;;  %v255_v2 = vmul.f32 %v362_v12, %v143_v56 }
  0x42   :  { %v366_v16 = vpop.eup %365  ;;  %270 = vst [vmem:[#allocation7 + $0x30] sm:$0xff] %v254_v61  ;;  %v256_v7 = vmul.f32 %v364_v14, %v144_v9 }
  0x43   :  { %v368_v11 = vpop.eup %367  ;;  %271 = vst [vmem:[#allocation7 + $0x38] sm:$0xff] %v255_v2  ;;  %v257_v13 = vmul.f32 %v366_v16, %v145_v51 }
  0x44   :  { %v370_v17 = vpop.eup %369  ;;  %272 = vst [vmem:[#allocation7 + $0x40] sm:$0xff] %v256_v7  ;;  %v258_v6 = vmul.f32 %v368_v11, %v146_v54 }
  0x45   :  { %v372_v21 = vpop.eup %371  ;;  %273 = vst [vmem:[#allocation7 + $0x48] sm:$0xff] %v257_v13  ;;  %v259_v20 = vmul.f32 %v370_v17, %v147_v58 }
  0x46   :  { %v374_v15 = vpop.eup %373  ;;  %274 = vst [vmem:[#allocation7 + $0x50] sm:$0xff] %v258_v6  ;;  %v260_v23 = vmul.f32 %v372_v21, %v148_v62 }
  0x47   :  { %v376_v22 = vpop.eup %375  ;;  %275 = vst [vmem:[#allocation7 + $0x58] sm:$0xff] %v259_v20  ;;  %v261_v25 = vmul.f32 %v374_v15, %v149_v18 }
  0x48   :  { %v378_v27 = vpop.eup %377  ;;  %276 = vst [vmem:[#allocation7 + $0x60] sm:$0xff] %v260_v23  ;;  %v262_v24 = vmul.f32 %v376_v22, %v150_v19 }
  0x49   :  { %277 = vst [vmem:[#allocation7 + $0x68] sm:$0xff] %v261_v25  ;;  %v263_v29 = vmul.f32 %v378_v27, %v151_v35 }
  0x4a   :  { %278 = vst [vmem:[#allocation7 + $0x70] sm:$0xff] %v262_v24 }
  0x4b   :  { %279 = vst [vmem:[#allocation7 + $0x78] sm:$0xff] %v263_v29 }
  0x4c   :  { %430 = shalt.err (!%p427_p0)
}
  0x4d   :  { %289 = dma.vmem_to_hbm [thread:$0]  %s287_s1, 2048, %s568_s2, [#allocation4]  }
  0x4e   :  { %443 = dma.done.wait [#allocation4], 2048  }
  0x4f   :  { %444 = vsyncadd [#allocation4], 4294965248 }
  0x50   :  { %293 = vsyncpa [#allocation3], 1 }
  0x51   :  { %294 = vsyncpa [#allocation6], 1 }
  0x52   :  { %295 = vsyncpa [#allocation4], 1 }

</bundles_post_ra>
